<compile_context>
chip_gen: v5e
topology: v5e:2x2
jax: 0.10.0
libtpu: 0.0.40
codegen_flags: <defaults>
</compile_context>

<pallas_src>
import functools

import jax
import jax.numpy as jnp
from jax.experimental import pallas as pl
from jax.experimental.pallas import tpu as pltpu

n_embd = 16
hidden = 4 * n_embd  # 64
dropout_p = 0.1      # nn.Dropout is identity in eval/inference mode (see TODO below)


def ffn_kernel(x_ref, w1_ref, b1_ref, w2_ref, b2_ref, o_ref, *, approximate):
    # x: (TM, C) bf16, w1: (C, H) bf16, b1: (1, H) f32, w2: (H, C) bf16, b2: (1, C) f32
    x = x_ref[...]

    # First linear on the MXU: bf16 operands, f32 accumulation.
    h = jnp.dot(x, w1_ref[...], preferred_element_type=jnp.float32)
    h = h + b1_ref[...]  # f32 bias add (VPU)

    if approximate:
        # tanh-approx GELU: transcendental goes to the EUP slot (free w.r.t. VALU).
        h = jax.nn.gelu(h, approximate=True)
    else:
        # Exact erf-based GELU in f32 (matches torch nn.GELU() default).
        h = 0.5 * h * (1.0 + jax.lax.erf(h * jnp.float32(0.7071067811865476)))

    # Second linear on the MXU: bf16 operands, f32 accumulation.
    o = jnp.dot(h.astype(jnp.bfloat16), w2_ref[...], preferred_element_type=jnp.float32)
    o = o + b2_ref[...]

    # TODO(synk): nn.Dropout(0.1) is identity in eval/inference mode; training-mode
    # stochastic dropout (pltpu.prng_seed / prng_random_bits + mask) intentionally not applied.
    o_ref[...] = o.astype(o_ref.dtype)


def _round_up(v, m):
    return ((v + m - 1) // m) * m


def prepare_params(w1, b1, w2, b2):
    """Hoist dtype casts out of the per-call path: bf16 matmul operands, f32 biases."""
    return (w1.astype(jnp.bfloat16),
            jnp.reshape(b1, (1, -1)).astype(jnp.float32),
            w2.astype(jnp.bfloat16),
            jnp.reshape(b2, (1, -1)).astype(jnp.float32))


@functools.partial(jax.jit, static_argnames=("tm", "approximate_gelu"))
def feed_forward(x, w1, b1, w2, b2, *, tm=1024, approximate_gelu=False):
    """x: (B, T, n_embd) -> (B, T, n_embd).  w1:(C,4C) b1:(1,4C)|(4C,) w2:(4C,C) b2:(1,C)|(C,)."""
    B, T, C = x.shape
    H = w1.shape[1]
    N = B * T

    # No-ops when params were already run through prepare_params().
    w1c = w1.astype(jnp.bfloat16)
    b1c = jnp.reshape(b1, (1, H)).astype(jnp.float32)
    w2c = w2.astype(jnp.bfloat16)
    b2c = jnp.reshape(b2, (1, C)).astype(jnp.float32)

    x2d = x.reshape(N, C).astype(jnp.bfloat16)

    # Row tiling: balance tiles so padded rows stay a small fraction of Np, and force
    # grid >= 2 when there is enough work so v7x's second TensorCore isn't idle.
    g = pl.cdiv(N, tm)
    if N >= 512:
        g = max(g, 2)
    tm_eff = max(8, _round_up(pl.cdiv(N, g), 8))
    Np = _round_up(N, tm_eff)
    if Np != N:
        x2d = jnp.pad(x2d, ((0, Np - N), (0, 0)))
    grid = (Np // tm_eff,)

    out = pl.pallas_call(
        functools.partial(ffn_kernel, approximate=approximate_gelu),
        out_shape=jax.ShapeDtypeStruct((Np, C), x.dtype),
        grid_spec=pltpu.PrefetchScalarGridSpec(
            num_scalar_prefetch=0,
            grid=grid,
            in_specs=[
                pl.BlockSpec((tm_eff, C), lambda i: (i, 0)),  # x rows: streamed / double-buffered
                pl.BlockSpec((C, H), lambda i: (0, 0)),       # weights: VMEM-resident (block==full)
                pl.BlockSpec((1, H), lambda i: (0, 0)),
                pl.BlockSpec((H, C), lambda i: (0, 0)),
                pl.BlockSpec((1, C), lambda i: (0, 0)),
            ],
            # Output last dim == full array dim (16): legal block, masked 16-lane store is far
            # cheaper than an 8x-padded lane-dense writeback at this channel count.
            out_specs=pl.BlockSpec((tm_eff, C), lambda i: (i, 0)),
        ),
        compiler_params=pltpu.CompilerParams(
            dimension_semantics=("parallel",),  # megacore sharding of the row axis on v7x
        ),
    )(x2d, w1c, b1c, w2c, b2c)

    if Np != N:
        out = out[:N]
    return out.reshape(B, T, C)


def init_params(key):
    """Deterministic init mirroring nn.Linear shapes (stored transposed: (in, out))."""
    k1, k2, k3, k4 = jax.random.split(key, 4)
    lim1 = 1.0 / jnp.sqrt(jnp.float32(n_embd))
    lim2 = 1.0 / jnp.sqrt(jnp.float32(hidden))
    w1 = jax.random.uniform(k1, (n_embd, hidden), jnp.float32, -lim1, lim1)
    b1 = jax.random.uniform(k2, (1, hidden), jnp.float32, -lim1, lim1)
    w2 = jax.random.uniform(k3, (hidden, n_embd), jnp.float32, -lim2, lim2)
    b2 = jax.random.uniform(k4, (1, n_embd), jnp.float32, -lim2, lim2)
    return w1, b1, w2, b2


if __name__ == "__main__":
    key = jax.random.PRNGKey(0)
    kx, kp = jax.random.split(key)

    B, T = 2, 8
    x = jax.random.normal(kx, (B, T, n_embd), jnp.float32)
    w1, b1, w2, b2 = init_params(kp)

    # Hoist casts out of the hot path (feedback: don't re-run weight prep every call).
    w1p, b1p, w2p, b2p = jax.block_until_ready(prepare_params(w1, b1, w2, b2))

    out = feed_forward(x, w1p, b1p, w2p, b2p)
    jax.block_until_ready(out)

    # Pure-JAX f32 reference (erf-based GELU, dropout = identity in eval mode).
    h_ref = x @ w1 + b1[0]
    h_ref = 0.5 * h_ref * (1.0 + jax.lax.erf(h_ref / jnp.sqrt(2.0)))
    ref = h_ref @ w2 + b2[0]

    assert out.shape == (B, T, n_embd)
    # Tolerance loosened vs pure-f32: MXU operands are bf16 (f32 accumulate).
    assert jnp.allclose(out, ref, atol=5e-2, rtol=5e-2), float(jnp.max(jnp.abs(out - ref)))

    print("KERNEL_OK")
</pallas_src>

<mosaic_0001>
module attributes {stable_mosaic.version = 11 : i64} {
  func.func @ffn_kernel(%arg0: i32, %arg1: memref<16x16xbf16, #tpu.memory_space<vmem>>, %arg2: memref<16x64xbf16, #tpu.memory_space<vmem>>, %arg3: memref<1x64xf32, #tpu.memory_space<vmem>>, %arg4: memref<64x16xbf16, #tpu.memory_space<vmem>>, %arg5: memref<1x16xf32, #tpu.memory_space<vmem>>, %arg6: memref<16x16xf32, #tpu.memory_space<vmem>>) attributes {dimension_semantics = [#tpu.dimension_semantics<parallel>], iteration_bounds = array<i64: 1>, scalar_prefetch = 0 : i64, scratch_operands = 0 : i64, tpu.core_type = #tpu.core_type<tc>, window_params = [{transform_indices = @transform_0, window_bounds = array<i64: 16, 16>}, {pipeline_mode = #tpu.pipeline_mode<synchronous>, transform_indices = @transform_1, window_bounds = array<i64: 16, 64>}, {pipeline_mode = #tpu.pipeline_mode<synchronous>, transform_indices = @transform_2, window_bounds = array<i64: 1, 64>}, {pipeline_mode = #tpu.pipeline_mode<synchronous>, transform_indices = @transform_3, window_bounds = array<i64: 64, 16>}, {pipeline_mode = #tpu.pipeline_mode<synchronous>, transform_indices = @transform_4, window_bounds = array<i64: 1, 16>}, {transform_indices = @transform_5, window_bounds = array<i64: 16, 16>}]} {
    %c0 = arith.constant 0 : index
    %c0_0 = arith.constant 0 : index
    %0 = vector.load %arg1[%c0, %c0_0] : memref<16x16xbf16, #tpu.memory_space<vmem>>, vector<16x16xbf16>
    %c0_1 = arith.constant 0 : index
    %c0_2 = arith.constant 0 : index
    %1 = vector.load %arg2[%c0_1, %c0_2] : memref<16x64xbf16, #tpu.memory_space<vmem>>, vector<16x64xbf16>
    %cst = arith.constant dense<0.000000e+00> : vector<16x64xf32>
    %2 = tpu.matmul %0, %1, %cst {dimension_numbers = #tpu.dot_dimension_numbers<[1], [0], [0], [1], [0, 0, 1, 1], [], []>} : vector<16x16xbf16>, vector<16x64xbf16>, vector<16x64xf32> -> vector<16x64xf32>
    %c0_3 = arith.constant 0 : index
    %c0_4 = arith.constant 0 : index
    %3 = vector.load %arg3[%c0_3, %c0_4] : memref<1x64xf32, #tpu.memory_space<vmem>>, vector<1x64xf32>
    %4 = vector.broadcast %3 : vector<1x64xf32> to vector<16x64xf32>
    %5 = arith.addf %2, %4 : vector<16x64xf32>
    %cst_5 = arith.constant 5.000000e-01 : f32
    %6 = vector.broadcast %cst_5 : f32 to vector<16x64xf32>
    %7 = arith.mulf %6, %5 : vector<16x64xf32>
    %cst_6 = arith.constant 0.707106769 : f32
    %8 = vector.broadcast %cst_6 : f32 to vector<16x64xf32>
    %9 = arith.mulf %5, %8 : vector<16x64xf32>
    %10 = math.erf %9 : vector<16x64xf32>
    %cst_7 = arith.constant 1.000000e+00 : f32
    %11 = vector.broadcast %cst_7 : f32 to vector<16x64xf32>
    %12 = arith.addf %11, %10 : vector<16x64xf32>
    %13 = arith.mulf %7, %12 : vector<16x64xf32>
    %14 = arith.truncf %13 : vector<16x64xf32> to vector<16x64xbf16>
    %c0_8 = arith.constant 0 : index
    %c0_9 = arith.constant 0 : index
    %15 = vector.load %arg4[%c0_8, %c0_9] : memref<64x16xbf16, #tpu.memory_space<vmem>>, vector<64x16xbf16>
    %cst_10 = arith.constant dense<0.000000e+00> : vector<16x16xf32>
    %16 = tpu.matmul %14, %15, %cst_10 {dimension_numbers = #tpu.dot_dimension_numbers<[1], [0], [0], [1], [0, 0, 1, 1], [], []>} : vector<16x64xbf16>, vector<64x16xbf16>, vector<16x16xf32> -> vector<16x16xf32>
    %c0_11 = arith.constant 0 : index
    %c0_12 = arith.constant 0 : index
    %17 = vector.load %arg5[%c0_11, %c0_12] : memref<1x16xf32, #tpu.memory_space<vmem>>, vector<1x16xf32>
    %18 = vector.broadcast %17 : vector<1x16xf32> to vector<16x16xf32>
    %19 = arith.addf %16, %18 : vector<16x16xf32>
    %c0_13 = arith.constant 0 : index
    %c0_14 = arith.constant 0 : index
    %20 = vector.load %arg6[%c0_13, %c0_14] : memref<16x16xf32, #tpu.memory_space<vmem>>, vector<16x16xf32>
    tpu.vector_store %arg6[%c0_13, %c0_14], %19 {strides = array<i32>} : memref<16x16xf32, #tpu.memory_space<vmem>>, vector<16x16xf32>,
    return
  }
  func.func @transform_0(%arg0: i32) -> (i32, i32) {
    %c0_i32 = arith.constant 0 : i32
    %c0_i32_0 = arith.constant 0 : i32
    return %arg0, %c0_i32 : i32, i32
  }
  func.func @transform_1(%arg0: i32) -> (i32, i32) {
    %c0_i32 = arith.constant 0 : i32
    %c0_i32_0 = arith.constant 0 : i32
    %c0_i32_1 = arith.constant 0 : i32
    return %c0_i32, %c0_i32_0 : i32, i32
  }
  func.func @transform_2(%arg0: i32) -> (i32, i32) {
    %c0_i32 = arith.constant 0 : i32
    %c0_i32_0 = arith.constant 0 : i32
    %c0_i32_1 = arith.constant 0 : i32
    return %c0_i32, %c0_i32_0 : i32, i32
  }
  func.func @transform_3(%arg0: i32) -> (i32, i32) {
    %c0_i32 = arith.constant 0 : i32
    %c0_i32_0 = arith.constant 0 : i32
    %c0_i32_1 = arith.constant 0 : i32
    return %c0_i32, %c0_i32_0 : i32, i32
  }
  func.func @transform_4(%arg0: i32) -> (i32, i32) {
    %c0_i32 = arith.constant 0 : i32
    %c0_i32_0 = arith.constant 0 : i32
    %c0_i32_1 = arith.constant 0 : i32
    return %c0_i32, %c0_i32_0 : i32, i32
  }
  func.func @transform_5(%arg0: i32) -> (i32, i32) {
    %c0_i32 = arith.constant 0 : i32
    %c0_i32_0 = arith.constant 0 : i32
    return %arg0, %c0_i32 : i32, i32
  }
}

</mosaic_0001>

<bundles_post_ra>
// kernel: feed_forward.1
= control target key start
LH: loop header
LB: loop body
LE: loop exit
PB: predicated region body
PF: predicated region fallthrough
CT: control target
= control target key end

     0   :  { %s372_s0 = inlined_call_operand.vmem [shape: bf16[16,16], index: 0, kind: input, shape index: {}]   ;;  %s373_s1 = inlined_call_operand.vmem [shape: bf16[16,64], index: 1, kind: input, shape index: {}]   ;;  %s374_s2 = inlined_call_operand.vmem [shape: f32[1,64], index: 2, kind: input, shape index: {}]   ;;  %s375_s3 = inlined_call_operand.vmem [shape: bf16[64,16], index: 3, kind: input, shape index: {}]   ;;  %s376_s4 = inlined_call_operand.vmem [shape: f32[1,16], index: 4, kind: input, shape index: {}]   ;;  %s377_s5 = inlined_call_operand.hbm [shape: f32[16,16], index: 5, kind: output, shape index: {}]  }
   0x1   :  { %v251_v0 = vld [vmem:[%s373_s1] sm:$0xff] }
   0x2   :  { %v250_v1 = vld [vmem:[%s372_s0] sm:$0xff] }
   0x3   :  { %10 = vsyncpa [#allocation3], 0  ;;  %52 = vmatpush.bf16.msra.mxu0 %v251_v0  ;;  %vm41_vm0 = vcmask 130048   ;;  %v259_v2 = vld [vmem:[%s374_s2] ss:$0 sm:$0xff]  ;;  %v255_v21 = vld [vmem:[%s375_s3 + $0x18] sm:$0xff] }
   0x4   :  { %192 = vmatpush.bf16.msra.mxu1 %v255_v21  ;;  %v254_v29 = vld [vmem:[%s375_s3 + $0x10] sm:$0xff]  ;;  %v253_v37 = vld [vmem:[%s375_s3 + $0x8] sm:$0xff]  ;;  %v252_v43 = vld [vmem:[%s375_s3] sm:$0xff]  ;;  %vm184_vm9 = vcmask 523264   ;;  %s291_s30 = smov [#allocation2]   ;;  %s210_s9 = sshll.u32 %s377_s5, 4  ;;  %s211_s9 = int_to_ptr.hbm [resolvable:$true] %s210_s9 }
   0x5   :  { %s208_s6 = sshll.u32 %s291_s30, 4  ;;  %s292_s10 = smov 128   ;;  %s209_s6 = int_to_ptr.vmem [resolvable:$true] %s208_s6 }
   0x6   :  { %230 = vmatmul.msk.bf16.vlgmr.msra.gmra.mxu0 %vm41_vm0, %v250_v1  ;;  %s293_s11 = smov 8  }
   0x8   :  { %193 = vmatpush.bf16.msra.mxu1 %v254_v29 }
   0xc   :  { %194 = vmatpush.bf16.msra.mxu1 %v253_v37 }
  0x10   :  { %195 = vmatpush.bf16.msra.mxu1 %v252_v43 }
  0x83   :  { %v54_v3 = vpop.f32.mrf.mxu0 }
  0x84   :  { %v334_v4 = vadd.f32 %v259_v2, %v54_v3 }
  0x86   :  { %v337_v5 = vmul.f32 0.70710677, %v334_v4 }
  0x88   :  { %v63_v6 = vmul.f32 %v337_v5, %v337_v5 }
  0x8a   :  { %v64_v7 = vmin.f32 %v63_v6, 16.0 }
  0x8b   :  { %v56_v8 = vpop.f32.mrf.mxu0 }
  0x8c   :  { %v65_v9 = vmul.f32 2.1237322e-06, %v64_v7  ;;  %v76_v10 = vmul.f32 3.8918573e-05, %v64_v7  ;;  %v341_v11 = vadd.f32 %v259_v2, %v56_v8 }
  0x8e   :  { %v66_v12 = vadd.f32 0.00028619796, %v65_v9  ;;  %v77_v13 = vadd.f32 0.001143296, %v76_v10  ;;  %v344_v14 = vmul.f32 0.70710677, %v341_v11 }
  0x90   :  { %v78_v15 = vmul.f32 %v77_v13, %v64_v7  ;;  %v103_v16 = vmul.f32 %v344_v14, %v344_v14  ;;  %v67_v17 = vmul.f32 %v66_v12, %v64_v7 }
  0x92   :  { %v79_v18 = vadd.f32 0.014752088, %v78_v15  ;;  %v104_v19 = vmin.f32 %v103_v16, 16.0  ;;  %v68_v24 = vadd.f32 0.0036580483, %v67_v17 }
  0x94   :  { %v80_v20 = vmul.f32 %v79_v18, %v64_v7  ;;  %v105_v22 = vmul.f32 2.1237322e-06, %v104_v19  ;;  %v116_v23 = vmul.f32 3.8918573e-05, %v104_v19  ;;  %v69_v32 = vmul.f32 %v68_v24, %v64_v7 }
  0x95   :  { %v60_v24 = vmul.f32 0.5, %v341_v11 }
  0x96   :  { %v81_v25 = vadd.f32 0.112945676, %v80_v20  ;;  %v106_v26 = vadd.f32 0.00028619796, %v105_v22  ;;  %v117_v27 = vadd.f32 0.001143296, %v116_v23 }
  0x97   :  { %v70_v39 = vadd.f32 0.05243302, %v69_v32  ;;  %v59_v23 = vmul.f32 0.5, %v334_v4 }
  0x98   :  { %v82_v28 = vmul.f32 %v81_v25, %v64_v7  ;;  %v107_v30 = vmul.f32 %v106_v26, %v104_v19  ;;  %v118_v31 = vmul.f32 %v117_v27, %v104_v19 }
  0x99   :  { %v71_v45 = vmul.f32 %v70_v39, %v64_v7 }
  0x9a   :  { %v83_v33 = vadd.f32 0.4994258, %v82_v28  ;;  %v108_v34 = vadd.f32 0.0036580483, %v107_v30  ;;  %v119_v35 = vadd.f32 0.014752088, %v118_v31 }
  0x9b   :  { %v72_v50 = vadd.f32 0.18741608, %v71_v45 }
  0x9c   :  { %v84_v36 = vmul.f32 %v83_v33, %v64_v7  ;;  %v120_v38 = vmul.f32 %v119_v35, %v104_v19  ;;  %v109_v41 = vmul.f32 %v108_v34, %v104_v19 }
  0x9d   :  { %v73_v55 = vmul.f32 %v72_v50, %v64_v7 }
  0x9e   :  { %v85_v40 = vadd.f32 1.0, %v84_v36  ;;  %v121_v42 = vadd.f32 0.112945676, %v120_v38  ;;  %v110_v46 = vadd.f32 0.05243302, %v109_v41 }
  0x9f   :  { %v74_v61 = vadd.f32 1.1283791, %v73_v55 }
  0xa0   :  { %261 = vrcp.f32 %v85_v40  ;;  %v122_v44 = vmul.f32 %v121_v42, %v104_v19  ;;  %v111_v52 = vmul.f32 %v110_v46, %v104_v19  ;;  %v97_v57 = vand.u32 2147483648, %v85_v40 }
  0xa1   :  { %v95_v59 = vand.u32 2147483647, %v85_v40  ;;  %vm91_vm2 = vweird.f32 %v85_v40  ;;  %v75_v6 = vmul.f32 %v74_v61, %v337_v5 }
  0xa2   :  { %v123_v47 = vadd.f32 0.4994258, %v122_v44  ;;  %v112_v58 = vadd.f32 0.18741608, %v111_v52  ;;  %v98_v0 = vor.u32 1.1754944e-38, %v97_v57 }
  0xa3   :  { %vm96_vm4 = vcmp.eq.f32.partialorder %v95_v59, 8.507059e+37 }
  0xa4   :  { %v124_v48 = vmul.f32 %v123_v47, %v104_v19  ;;  %v113_v1 = vmul.f32 %v112_v58, %v104_v19 }
  0xa6   :  { %v262_v49 = vpop.eup %261  ;;  %v125_v53 = vadd.f32 1.0, %v124_v48  ;;  %v114_v7 = vadd.f32 1.1283791, %v113_v1 }
  0xa7   :  { %v87_v51 = vmul.f32 %v262_v49, %v85_v40  ;;  %vm92_vm1 = vweird.f32 %v262_v49 }
  0xa8   :  { %263 = vrcp.f32 %v125_v53  ;;  %vm93_vm3 = vmor %vm91_vm2, %vm92_vm1  ;;  %v137_v9 = vand.u32 2147483648, %v125_v53  ;;  %v135_v13 = vand.u32 2147483647, %v125_v53  ;;  %vm131_vm6 = vweird.f32 %v125_v53 }
  0xa9   :  { %v88_v54 = vsub.f32 1.0, %v87_v51  ;;  %v115_v18 = vmul.f32 %v114_v7, %v344_v14  ;;  %v260_v14 = vld [vmem:[%s376_s4] ss:$0 sm:$0xff] }
  0xaa   :  { %v138_v16 = vor.u32 1.1754944e-38, %v137_v9  ;;  %vm136_vm8 = vcmp.eq.f32.partialorder %v135_v13, 8.507059e+37 }
  0xab   :  { %v89_v56 = vmul.f32 %v262_v49, %v88_v54 }
  0xad   :  { %v90_v60 = vadd.f32 %v262_v49, %v89_v56 }
  0xae   :  { %v264_v62 = vpop.eup %263 }
  0xaf   :  { %v94_v63 = vsel %vm93_vm3, %v262_v49, %v90_v60  ;;  %v127_v2 = vmul.f32 %v264_v62, %v125_v53  ;;  %vm132_vm5 = vweird.f32 %v264_v62 }
  0xb0   :  { %v99_v3 = vsel %vm96_vm4, %v98_v0, %v94_v63  ;;  %vm133_vm7 = vmor %vm131_vm6, %vm132_vm5 }
  0xb1   :  { %v128_v8 = vsub.f32 1.0, %v127_v2  ;;  %v100_v10 = vmul.f32 %v99_v3, %v75_v6 }
  0xb3   :  { %v129_v12 = vmul.f32 %v264_v62, %v128_v8  ;;  %v231_v17 = vclamps-f32 %v100_v10, 1.0 }
  0xb5   :  { %v130_v15 = vadd.f32 %v264_v62, %v129_v12  ;;  %v143_v22 = vadd.f32 1.0, %v231_v17 }
  0xb7   :  { %v134_v19 = vsel %vm133_vm7, %v264_v62, %v130_v15  ;;  %v145_v26 = vmul.f32 %v143_v22, %v59_v23 }
  0xb8   :  { %v139_v20 = vsel %vm136_vm8, %v138_v16, %v134_v19 }
  0xb9   :  { %v140_v21 = vmul.f32 %v139_v20, %v115_v18 }
  0xbb   :  { %v232_v5 = vclamps-f32 %v140_v21, 1.0 }
  0xbd   :  { %v144_v25 = vadd.f32 1.0, %v232_v5 }
  0xbf   :  { %v146_v27 = vmul.f32 %v144_v25, %v60_v24 }
  0xc1   :  { %v147_v28 = vpack.c.bf16 %v146_v27, %v145_v26 }
  0xc3   :  { %249 = vmatmul.msk.bf16.vlgmr.msra.gmra.mxu1 %vm184_vm9, %v147_v28 }
 0x140   :  { %v197_v29 = vpop.f32.mrf.mxu1 }
 0x141   :  { %v198_v30 = vadd.f32 %v260_v14, %v197_v29 }
 0x143   :  { %202 = vst.msk [vmem:[#allocation2] sm:$0xff] %vm41_vm0, %v198_v30 }
 0x148   :  { %v199_v4 = vpop.f32.mrf.mxu1 }
 0x149   :  { %v200_v11 = vadd.f32 %v260_v14, %v199_v4 }
 0x14b   :  { %203 = vst.msk [vmem:[#allocation2 + $0x8] sm:$0xff] %vm41_vm0, %v200_v11 }
 0x14c   :  { %216 = dma.vmem_to_hbm [thread:$0]  %s209_s6, 256, %s211_s9, [#allocation3], %s292_s10, %s292_s10, %s293_s11  }
 0x14d   :  { %289 = dma.done.wait [#allocation3], 256  }
 0x14e   :  { %290 = vsyncadd [#allocation3], 4294967040 }
 0x14f   :  { %221 = vsyncpa [#allocation3], 1 }

</bundles_post_ra>
